<compile_context>
chip_gen: v6e
topology: v6e:2x2x1
jax: 0.10.0
libtpu: 0.0.40
codegen_flags: <defaults>
</compile_context>

<pallas_src>
from functools import partial

import jax
import jax.numpy as jnp
from jax.experimental import pallas as pl
from jax.experimental.pallas import tpu as pltpu

NEG_SLOPE = 0.2          # PyG GATConv default LeakyReLU negative slope
LANE = 128               # lane width: hidden dim AND node count padded to this
MAX_TILE_N = 256         # destination-node tile cap (v6e can go 512; v7x 128-256)


def _round_up(x, m):
    return ((x + m - 1) // m) * m


def _choose_tiling(n):
    """(padded_n, tile_n): padded_n a multiple of 128 (lane-dense adjacency /
    softmax axis), tile_n a multiple of 128 dividing padded_n, preferring
    >= 2 grid steps so v7x's two TensorCores both get work."""
    np_ = _round_up(max(n, 1), LANE)
    tn = LANE
    for t in range(2 * LANE, MAX_TILE_N + 1, LANE):
        if np_ % t == 0 and np_ // t >= 2:
            tn = t
    return np_, tn


def _vmem_limit(tn, np_, hp, heads):
    """Scoped-VMEM request sized from the actual per-tile footprint."""
    est = (2 * tn * np_                       # int8 adj tile, double buffered
           + 2 * heads * np_ * hp * 2         # resident z (bf16)
           + 2 * heads * np_ * 4              # resident s_src (f32)
           + 2 * tn * hp * (2 + 4)            # xd in + out tile double buffers
           + 2 * (heads + 1) * hp * hp * 2    # packed weights + fused post
           + (3 + 2 * heads) * tn * np_ * 4   # softmax temporaries (headroom)
           + (4 << 20))
    try:   # generation-aware cap (v7x has only 64 MiB VMEM per TensorCore)
        cap = int(pltpu.get_tpu_info().vmem_capacity_bytes) * 3 // 4
    except Exception:
        cap = 48 << 20
    return int(min(max(est, 16 << 20), cap))


# ----------------------------------------------------------------------------
# Pallas kernels
# ----------------------------------------------------------------------------
def _feat_kernel(x_ref, w_ref, vsrc_ref, z_ref, s_ref, *, num_heads):
    """Grid-invariant per-layer pre-pass, tiled over SOURCE nodes.

    Computes once per layer (instead of once per destination tile):
      z_h      = x @ W_h            (all heads, one packed MXU call)
      s_src[h] = v_src[h] . x       (source attention logits, all heads)
    """
    x = x_ref[...]                                        # [TS, HP] bf16
    hp = x_ref.shape[1]
    z = jnp.dot(x, w_ref[...], preferred_element_type=jnp.float32)
    for h in range(num_heads):                            # heads small, static
        z_ref[h] = z[:, h * hp:(h + 1) * hp].astype(jnp.bfloat16)
    s_ref[...] = jax.lax.dot_general(
        vsrc_ref[...], x, (((1,), (1,)), ((), ())),
        preferred_element_type=jnp.float32)               # [heads, TS]


def _gat_kernel(xd_ref, adj_ref, z_ref, ssrc_ref, vdst_ref, b_ref, *rest,
                num_heads, apply_post):
    """One destination-node tile of a dense multi-head GAT layer.

    Rows = this tile's destination nodes (sublanes), columns = all source
    nodes (lanes).  Per-head softmax runs along lanes; aggregation of ALL
    heads is a single [TN, heads*NP] @ [heads*NP, HP] MXU matmul (heads are
    averaged, so the stacked contraction yields the head-sum directly).
    The per-head feature transform z and the source logits s_src come from
    _feat_kernel (grid-invariant, not recomputed per tile).
    """
    if apply_post:
        post_ref, o_ref = rest       # fused encoder_to_decoder weight
    else:
        (o_ref,) = rest

    adj = adj_ref[...]               # [TN, NP] int8, adj[d, s] = 1 iff s -> d
    # additive mask bias: 0 on edges, -1e30 elsewhere; built once per tile and
    # shared by every head (hoisted out of the unrolled head loop).
    mask_bias = (adj.astype(jnp.float32) - 1.0) * 1e30

    # all heads' destination logits in one small MXU call -> [TN, heads]
    s_dst = jax.lax.dot_general(
        xd_ref[...], vdst_ref[...], (((1,), (1,)), ((), ())),
        preferred_element_type=jnp.float32)

    s_src = ssrc_ref[...]            # [heads, NP] f32 (precomputed)

    alphas = []
    for h in range(num_heads):       # static unroll, heads small
        e = s_dst[:, h:h + 1] + s_src[h:h + 1, :]         # [TN, NP]
        e = jnp.maximum(e, NEG_SLOPE * e)                 # leaky relu (1 max)
        e = e + mask_bias                                 # mask non-edges
        e = e - jnp.max(e, axis=-1, keepdims=True)        # softmax along lanes
        p = jnp.exp(e)
        inv = pl.reciprocal(jnp.sum(p, axis=-1, keepdims=True), approx=True)
        alphas.append((p * inv).astype(jnp.bfloat16))

    # fused aggregation over (heads * NP): one large-K MXU call, no
    # loop-carried f32 accumulator.
    alpha_all = jnp.concatenate(alphas, axis=-1)          # [TN, heads*NP]
    out = jnp.dot(alpha_all, z_ref[...],
                  preferred_element_type=jnp.float32)     # [TN, HP]
    out = out * (1.0 / float(num_heads)) + b_ref[...]
    if apply_post:                   # fused encoder_to_decoder
        out = jnp.dot(out.astype(jnp.bfloat16), post_ref[...],
                      preferred_element_type=jnp.float32)
    o_ref[...] = out.astype(o_ref.dtype)


def _sce_loss_kernel(x_ref, y_ref, o_ref, *, alpha, inv_m):
    """Scaled cosine error: mean((1 - cos(x, y))^alpha), alpha a positive int."""
    x = x_ref[...]
    y = y_ref[...]
    xi = jax.lax.rsqrt(jnp.sum(x * x, axis=-1, keepdims=True) + 1e-24)
    yi = jax.lax.rsqrt(jnp.sum(y * y, axis=-1, keepdims=True) + 1e-24)
    cos = jnp.sum((x * xi) * (y * yi), axis=-1, keepdims=True)   # [M, 1]
    base = jnp.maximum(1.0 - cos, 0.0)     # clamp: cos can exceed 1 by ULPs
    loss = base
    for _ in range(int(alpha) - 1):        # integer power via repeated multiply
        loss = loss * base
    o_ref[...] = jnp.sum(loss, axis=0, keepdims=True) * inv_m


# ----------------------------------------------------------------------------
# Wrappers (pallas_call plumbing)
# ----------------------------------------------------------------------------
def gat_conv(x, adj_t, w_all, v_src, v_dst, bias, post_wt=None,
             tile_n=MAX_TILE_N, out_dtype=jnp.float32):
    """Dense GAT layer tiled over destination nodes.

    x       : [NP, HP]          bf16 node features (row/lane padded)
    adj_t   : [NP, NP]          int8 mask, adj_t[d, s] = 1 iff edge s -> d
    w_all   : [HP, heads*HP]    bf16 per-head weights concatenated on lanes
    v_src   : [heads, HP]       bf16 folded attention vectors (W @ a_src)
    v_dst   : [heads, HP]       bf16 folded attention vectors (W @ a_dst)
    bias    : [1, HP]           f32
    post_wt : [HP, HP] | None   bf16 fused post-linear (out @ post_wt)
    """
    np_, hp = x.shape
    heads = v_src.shape[0]
    tn = min(tile_n, np_)
    assert np_ % tn == 0 and np_ % LANE == 0 and tn % LANE == 0

    # --- pre-pass: grid-invariant feature transform + source logits ---------
    z, s_src = pl.pallas_call(
        partial(_feat_kernel, num_heads=heads),
        out_shape=(jax.ShapeDtypeStruct((heads, np_, hp), jnp.bfloat16),
                   jax.ShapeDtypeStruct((heads, np_), jnp.float32)),
        grid=(np_ // tn,),
        in_specs=[pl.BlockSpec((tn, hp), lambda i: (i, 0)),           # x tile
                  pl.BlockSpec((hp, heads * hp), lambda i: (0, 0)),   # weights
                  pl.BlockSpec((heads, hp), lambda i: (0, 0))],       # v_src
        out_specs=(pl.BlockSpec((heads, tn, hp), lambda i: (0, i, 0)),
                   pl.BlockSpec((heads, tn), lambda i: (0, i))),
        compiler_params=pltpu.CompilerParams(
            dimension_semantics=("parallel",)),
    )(x, w_all, v_src)
    z_stacked = z.reshape(heads * np_, hp)   # row-major collapse -> free

    # --- main pass: masked-softmax attention over destination tiles ---------
    in_specs = [
        pl.BlockSpec((tn, hp), lambda i: (i, 0)),            # xd (dst tile)
        pl.BlockSpec((tn, np_), lambda i: (i, 0)),            # adj rows (int8)
        pl.BlockSpec((heads * np_, hp), lambda i: (0, 0)),    # z (resident)
        pl.BlockSpec((heads, np_), lambda i: (0, 0)),          # s_src (resident)
        pl.BlockSpec((heads, hp), lambda i: (0, 0)),           # v_dst
        pl.BlockSpec((1, hp), lambda i: (0, 0)),               # bias
    ]
    args = [x, adj_t, z_stacked, s_src, v_dst, bias]
    apply_post = post_wt is not None
    if apply_post:
        in_specs.append(pl.BlockSpec((hp, hp), lambda i: (0, 0)))
        args.append(post_wt)

    return pl.pallas_call(
        partial(_gat_kernel, num_heads=heads, apply_post=apply_post),
        out_shape=jax.ShapeDtypeStruct((np_, hp), out_dtype),
        grid=(np_ // tn,),
        in_specs=in_specs,
        out_specs=pl.BlockSpec((tn, hp), lambda i: (i, 0)),
        compiler_params=pltpu.CompilerParams(
            # dst tiles are independent -> shard across TensorCores on v7x;
            # harmless on single-TC v5e/v6e.
            dimension_semantics=("parallel",),
            vmem_limit_bytes=_vmem_limit(tn, np_, hp, heads)),
    )(*args)


def sce_loss(origin, output, alpha_l):
    m, h = origin.shape
    out = pl.pallas_call(
        partial(_sce_loss_kernel, alpha=int(alpha_l), inv_m=1.0 / float(m)),
        out_shape=jax.ShapeDtypeStruct((1, 1), jnp.float32),
        grid=(1,),     # masked set is tiny; tile over M only if it grows
        in_specs=[pl.BlockSpec((m, h), lambda i: (0, 0)),
                  pl.BlockSpec((m, h), lambda i: (0, 0))],
        out_specs=pl.BlockSpec((1, 1), lambda i: (0, 0)),
    )(origin, output)
    return out[0, 0]


# ----------------------------------------------------------------------------
# Glue: adjacency, parameter packing, GraphMAE forward
# ----------------------------------------------------------------------------
def build_adjacency_t(edge_index, num_nodes, padded_n):
    """Dense [dst, src] adjacency mask in int8 (self-loops added, PyG default)."""
    src, dst = edge_index[0], edge_index[1]
    adj_t = jnp.zeros((padded_n, padded_n), jnp.int8)
    adj_t = adj_t.at[dst, src].set(1)
    diag = jnp.arange(num_nodes)
    adj_t = adj_t.at[diag, diag].set(1)
    return adj_t


def _pack_gat_params(w, a_src, a_dst, bias, hid, hp):
    """Pad / pack per-head GAT parameters for the kernels (done once, in XLA)."""
    heads = w.shape[0]
    w_p = jnp.zeros((heads, hp, hp), jnp.float32).at[:, :hid, :hid].set(w)
    w_all = (jnp.transpose(w_p, (1, 0, 2)).reshape(hp, heads * hp)
             .astype(jnp.bfloat16))                       # [HP, heads*HP]
    # fold attention vectors through W:  z . a  ==  x . (W @ a)
    v_src = jnp.einsum("hij,hj->hi", w, a_src)            # [heads, hid]
    v_dst = jnp.einsum("hij,hj->hi", w, a_dst)            # [heads, hid]
    v_src_p = (jnp.zeros((heads, hp), jnp.float32).at[:, :hid].set(v_src)
               .astype(jnp.bfloat16))
    v_dst_p = (jnp.zeros((heads, hp), jnp.float32).at[:, :hid].set(v_dst)
               .astype(jnp.bfloat16))
    b_p = jnp.zeros((1, hp), jnp.float32).at[:, :hid].set(bias)
    return w_all, v_src_p, v_dst_p, b_p


def graphmae_forward(params, node_ids, edge_index, mask_ratio, perm_key,
                     alpha_l=3):
    hid = params["emb"].shape[1]
    x_emb = params["emb"][node_ids]                       # embedding gather (glue)
    n = x_emb.shape[0]
    num_mask = int(mask_ratio * n)
    mask_select = jax.random.permutation(perm_key, n)[:num_mask]

    # enc_mask: PyTorch overwrites x_emb in place, so the "origin" rows used by
    # the loss are the mask token itself -- reproduced exactly.
    x_masked = x_emb.at[mask_select].set(params["mask"][0])
    x_emb = x_masked

    np_, tn = _choose_tiling(n)
    hp = _round_up(hid, LANE)

    adj_t = build_adjacency_t(edge_index, n, np_)

    enc = _pack_gat_params(params["enc_w"], params["enc_a_src"],
                           params["enc_a_dst"], params["enc_b"], hid, hp)
    dec = _pack_gat_params(params["dec_w"], params["dec_a_src"],
                           params["dec_a_dst"], params["dec_b"], hid, hp)
    e2d_wt_p = (jnp.zeros((hp, hp), jnp.float32)
                .at[:hid, :hid].set(params["e2d_wt"]).astype(jnp.bfloat16))

    xp = (jnp.zeros((np_, hp), jnp.float32)
          .at[:n, :hid].set(x_masked).astype(jnp.bfloat16))

    # encoder GAT with encoder_to_decoder fused into its tail; output emitted
    # directly in bf16 (what the decoder consumes).
    x_rep = gat_conv(xp, adj_t, *enc, post_wt=e2d_wt_p, tile_n=tn,
                     out_dtype=jnp.bfloat16)
    if np_ > n:
        # scrub padded rows -> the decoder pre-pass sees zero z for padded
        # sources (keep this invariant; padded-dst softmax rows are garbage).
        x_rep = x_rep.at[n:].set(0)
    if params.get("dmask") is not None:
        dmask_p = jnp.zeros((hp,), jnp.float32).at[:hid].set(params["dmask"][0])
        x_rep = x_rep.at[mask_select].set(dmask_p.astype(x_rep.dtype))

    x_dec = gat_conv(x_rep, adj_t, *dec, tile_n=tn)       # f32 output for loss

    origin = x_emb[mask_select]                           # [M, hid]
    output = x_dec[:n, :hid][mask_select]                 # [M, hid]
    return sce_loss(origin, output, alpha_l)


def init_params(key, num_protein, hid, heads, use_dmask=True):
    ks = jax.random.split(key, 12)
    xavier = lambda k, shape: jax.random.normal(k, shape, jnp.float32) * \
        jnp.sqrt(2.0 / (shape[-2] + shape[-1]))
    params = {
        "emb": jax.random.normal(ks[0], (num_protein, hid), jnp.float32),
        "mask": xavier(ks[1], (1, hid)),
        "enc_w": xavier(ks[2], (heads, hid, hid)),
        "enc_a_src": xavier(ks[3], (heads, hid)),
        "enc_a_dst": xavier(ks[4], (heads, hid)),
        "enc_b": jnp.zeros((1, hid), jnp.float32),
        "dec_w": xavier(ks[5], (heads, hid, hid)),
        "dec_a_src": xavier(ks[6], (heads, hid)),
        "dec_a_dst": xavier(ks[7], (heads, hid)),
        "dec_b": jnp.zeros((1, hid), jnp.float32),
        # nn.Linear stores W as [out, in]; pre-transposed so kernel does x @ W^T.
        "e2d_wt": jnp.transpose(xavier(ks[8], (hid, hid))),
        "dmask": xavier(ks[9], (1, hid)) if use_dmask else None,
    }
    return params


if __name__ == "__main__":
    NUM_PROTEIN = 64   # embedding vocabulary
    HID = 32
    HEADS = 2
    N_NODES = 16
    N_EDGES = 48
    ALPHA_L = 3
    MASK_RATIO = 0.3

    root = jax.random.PRNGKey(0)
    k_params, k_nodes, k_edges, k_perm = jax.random.split(root, 4)

    params = init_params(k_params, NUM_PROTEIN, HID, HEADS, use_dmask=True)
    node_ids = jax.random.randint(k_nodes, (N_NODES,), 0, NUM_PROTEIN)
    edge_index = jax.random.randint(k_edges, (2, N_EDGES), 0, N_NODES)

    loss = graphmae_forward(params, node_ids, edge_index, MASK_RATIO, k_perm,
                            alpha_l=ALPHA_L)
    jax.block_until_ready(loss)
    assert loss.shape == () and bool(jnp.isfinite(loss))
    print("KERNEL_OK")
</pallas_src>

<mosaic_0001>
module attributes {stable_mosaic.version = 11 : i64} {
  func.func @_feat_kernel(%arg0: i32, %arg1: memref<128x128xbf16, #tpu.memory_space<vmem>>, %arg2: memref<128x256xbf16, #tpu.memory_space<vmem>>, %arg3: memref<2x128xbf16, #tpu.memory_space<vmem>>, %arg4: memref<2x128x128xbf16, #tpu.memory_space<vmem>>, %arg5: memref<2x128xf32, #tpu.memory_space<vmem>>) attributes {dimension_semantics = [#tpu.dimension_semantics<parallel>], iteration_bounds = array<i64: 1>, scalar_prefetch = 0 : i64, scratch_operands = 0 : i64, tpu.core_type = #tpu.core_type<tc>, window_params = [{transform_indices = @transform_0, window_bounds = array<i64: 128, 128>}, {pipeline_mode = #tpu.pipeline_mode<synchronous>, transform_indices = @transform_1, window_bounds = array<i64: 128, 256>}, {pipeline_mode = #tpu.pipeline_mode<synchronous>, transform_indices = @transform_2, window_bounds = array<i64: 2, 128>}, {transform_indices = @transform_3, window_bounds = array<i64: 2, 128, 128>}, {transform_indices = @transform_4, window_bounds = array<i64: 2, 128>}]} {
    %c0 = arith.constant 0 : index
    %c0_0 = arith.constant 0 : index
    %0 = vector.load %arg1[%c0, %c0_0] : memref<128x128xbf16, #tpu.memory_space<vmem>>, vector<128x128xbf16>
    %c0_1 = arith.constant 0 : index
    %c0_2 = arith.constant 0 : index
    %1 = vector.load %arg2[%c0_1, %c0_2] : memref<128x256xbf16, #tpu.memory_space<vmem>>, vector<128x256xbf16>
    %cst = arith.constant dense<0.000000e+00> : vector<128x256xf32>
    %2 = tpu.matmul %0, %1, %cst {dimension_numbers = #tpu.dot_dimension_numbers<[1], [0], [0], [1], [0, 0, 1, 1], [], []>} : vector<128x128xbf16>, vector<128x256xbf16>, vector<128x256xf32> -> vector<128x256xf32>
    %3 = vector.extract_strided_slice %2 {offsets = [0, 0], sizes = [128, 128], strides = [1, 1]} : vector<128x256xf32> to vector<128x128xf32>
    %4 = arith.truncf %3 : vector<128x128xf32> to vector<128x128xbf16>
    %c0_3 = arith.constant 0 : index
    %c0_4 = arith.constant 0 : index
    %c0_5 = arith.constant 0 : index
    %5 = vector.load %arg4[%c0_3, %c0_4, %c0_5] : memref<2x128x128xbf16, #tpu.memory_space<vmem>>, vector<1x128x128xbf16>
    %6 = vector.shape_cast %5 : vector<1x128x128xbf16> to vector<128x128xbf16>
    %7 = vector.shape_cast %4 : vector<128x128xbf16> to vector<1x128x128xbf16>
    tpu.vector_store %arg4[%c0_3, %c0_4, %c0_5], %7 {strides = array<i32>} : memref<2x128x128xbf16, #tpu.memory_space<vmem>>, vector<1x128x128xbf16>,
    %8 = vector.extract_strided_slice %2 {offsets = [0, 128], sizes = [128, 128], strides = [1, 1]} : vector<128x256xf32> to vector<128x128xf32>
    %9 = arith.truncf %8 : vector<128x128xf32> to vector<128x128xbf16>
    %c1 = arith.constant 1 : index
    %c0_6 = arith.constant 0 : index
    %c0_7 = arith.constant 0 : index
    %10 = vector.load %arg4[%c1, %c0_6, %c0_7] : memref<2x128x128xbf16, #tpu.memory_space<vmem>>, vector<1x128x128xbf16>
    %11 = vector.shape_cast %10 : vector<1x128x128xbf16> to vector<128x128xbf16>
    %12 = vector.shape_cast %9 : vector<128x128xbf16> to vector<1x128x128xbf16>
    tpu.vector_store %arg4[%c1, %c0_6, %c0_7], %12 {strides = array<i32>} : memref<2x128x128xbf16, #tpu.memory_space<vmem>>, vector<1x128x128xbf16>,
    %c0_8 = arith.constant 0 : index
    %c0_9 = arith.constant 0 : index
    %13 = vector.load %arg3[%c0_8, %c0_9] : memref<2x128xbf16, #tpu.memory_space<vmem>>, vector<2x128xbf16>
    %cst_10 = arith.constant dense<0.000000e+00> : vector<2x128xf32>
    %14 = tpu.matmul %13, %0, %cst_10 {dimension_numbers = #tpu.dot_dimension_numbers<[1], [1], [0], [0], [0, 0, 1, 0], [], []>} : vector<2x128xbf16>, vector<128x128xbf16>, vector<2x128xf32> -> vector<2x128xf32>
    %c0_11 = arith.constant 0 : index
    %c0_12 = arith.constant 0 : index
    %15 = vector.load %arg5[%c0_11, %c0_12] : memref<2x128xf32, #tpu.memory_space<vmem>>, vector<2x128xf32>
    tpu.vector_store %arg5[%c0_11, %c0_12], %14 {strides = array<i32>} : memref<2x128xf32, #tpu.memory_space<vmem>>, vector<2x128xf32>,
    return
  }
  func.func @transform_0(%arg0: i32) -> (i32, i32) {
    %c0_i32 = arith.constant 0 : i32
    %c0_i32_0 = arith.constant 0 : i32
    return %arg0, %c0_i32 : i32, i32
  }
  func.func @transform_1(%arg0: i32) -> (i32, i32) {
    %c0_i32 = arith.constant 0 : i32
    %c0_i32_0 = arith.constant 0 : i32
    %c0_i32_1 = arith.constant 0 : i32
    return %c0_i32, %c0_i32_0 : i32, i32
  }
  func.func @transform_2(%arg0: i32) -> (i32, i32) {
    %c0_i32 = arith.constant 0 : i32
    %c0_i32_0 = arith.constant 0 : i32
    %c0_i32_1 = arith.constant 0 : i32
    return %c0_i32, %c0_i32_0 : i32, i32
  }
  func.func @transform_3(%arg0: i32) -> (i32, i32, i32) {
    %c0_i32 = arith.constant 0 : i32
    %c0_i32_0 = arith.constant 0 : i32
    %c0_i32_1 = arith.constant 0 : i32
    return %c0_i32, %arg0, %c0_i32_0 : i32, i32, i32
  }
  func.func @transform_4(%arg0: i32) -> (i32, i32) {
    %c0_i32 = arith.constant 0 : i32
    %c0_i32_0 = arith.constant 0 : i32
    return %c0_i32, %arg0 : i32, i32
  }
}

</mosaic_0001>

<bundles_post_ra>
// kernel: tpu_custom_call.1
= control target key start
LH: loop header
LB: loop body
LE: loop exit
PB: predicated region body
PF: predicated region fallthrough
CT: control target
= control target key end

     0   :  { %10 = vsyncpa [#allocation3], 0  ;;  %s971_s0 = inlined_call_operand.hbm [shape: bf16[128,128], index: 0, kind: input, shape index: {}]   ;;  %s972_s1 = inlined_call_operand.hbm [shape: bf16[128,256], index: 1, kind: input, shape index: {}]   ;;  %s973_s2 = inlined_call_operand.vmem [shape: bf16[2,128], index: 2, kind: input, shape index: {}]   ;;  %s974_s3 = inlined_call_operand.hbm [shape: bf16[2,128,128], index: 3, kind: output, shape index: {0}]   ;;  %s975_s4 = inlined_call_operand.hbm [shape: f32[2,128], index: 4, kind: output, shape index: {1}]  }
   0x1   :  { %11 = vsyncpa [#allocation6], 0 }
   0x2   :  { %12 = vsyncpa [#allocation4], 0 }
   0x3   :  { %13 = vsyncpa [#allocation9], 0  ;;  %s897_s15 = smov [#allocation2]  }
   0x4   :  { %s19_s16 = sshll.u32 %s897_s15, 4  ;;  %s20_s16 = int_to_ptr.vmem [resolvable:$true] %s19_s16 }
   0x5   :  { %s817_s17 = scalar_lea.vmem %s20_s16, 1024  ;;  %p822_p1 = scmp.lt.s32.totalorder %s20_s16, %s20_s16 }
   0x6   :  { %p818_p0 = scmp.ne.s32.totalorder %s20_s16, %s817_s17  ;;  %p823_p2 = scmp.lt.s32.totalorder %s817_s17, %s817_s17 }
   0x8   :  { %p824_p3 = por %p823_p2, %p822_p1 }
   0xa   :  { %p825_p4 = pnand %p824_p3, %p818_p0 }
   0xc   :  { %828 = shalt.err (!%p825_p4)
}
   0xd   :  { %s898_s18 = smov 64   ;;  %s899_s19 = smov 4  }
   0xe   :  { %25 = dma.hbm_to_vmem [thread:$0]  %s971_s0, 1024, %s20_s16, [#allocation3], %s898_s18, %s898_s18, %s899_s19  }
   0xf   :  { %s900_s22 = smov [#allocation5]  }
  0x10   :  { %s31_s23 = sshll.u32 %s900_s22, 4  ;;  %s32_s23 = int_to_ptr.vmem [resolvable:$true] %s31_s23 }
  0x11   :  { %s837_s24 = scalar_lea.vmem %s32_s23, 2048  ;;  %p842_p6 = scmp.lt.s32.totalorder %s32_s23, %s32_s23 }
  0x12   :  { %p838_p5 = scmp.ne.s32.totalorder %s32_s23, %s837_s24  ;;  %p843_p7 = scmp.lt.s32.totalorder %s837_s24, %s837_s24 }
  0x14   :  { %p844_p8 = por %p843_p7, %p842_p6 }
  0x16   :  { %p845_p9 = pnand %p844_p8, %p838_p5 }
  0x18   :  { %848 = shalt.err (!%p845_p9)
}
  0x19   :  { %s901_s25 = smov 128   ;;  %s902_s26 = smov 8  }
  0x1a   :  { %37 = dma.hbm_to_vmem [thread:$0]  %s972_s1, 2048, %s32_s23, [#allocation6], %s901_s25, %s901_s25, %s902_s26  }
  0x1b   :  { %889 = dma.done.wait [#allocation3], 1024  }
  0x1c   :  { %890 = vsyncadd [#allocation3], 4294966272 }
  0x1d   :  { %891 = dma.done.wait [#allocation6], 2048  }
  0x1e   :  { %892 = vsyncadd [#allocation6], 4294965248  ;;  %v903_v0 = vmov 0.0   ;;  %v904_v1 = vmov 0   ;;  %vm905_vm0 = vmmov 0   ;;  %v795_v9 = vld [vmem:[#allocation2 + $0x38] sm:$0xff]  }
  0x1f   :  { %746 = vmatprep.subr.bf16.mxu1 %v903_v0  ;;  %239 = vmatprep.mubr.bf16.mxu0 %v904_v1  ;;  %v777_v2 = vld [vmem:[#allocation5 + $0x74] ss:$8 sps:$4 sm:$0xff]   ;;  %v779_v3 = vld [vmem:[#allocation5 + $0x70] ss:$8 sps:$4 sm:$0xff]   ;;  %v780_v4 = vld [vmem:[#allocation5 + $0x64] ss:$8 sps:$4 sm:$0xff]  }
  0x20   :  { %762 = vmatprep.mubr.msk.bf16.mxu1 %vm905_vm0, %v903_v0  ;;  %207 = vmatprep.subr.bf16.mxu0 %v777_v2  ;;  %v782_v5 = vld [vmem:[#allocation5 + $0x60] ss:$8 sps:$4 sm:$0xff]   ;;  %v783_v6 = vld [vmem:[#allocation5 + $0x54] ss:$8 sps:$4 sm:$0xff]   ;;  %v785_v7 = vld [vmem:[#allocation5 + $0x50] ss:$8 sps:$4 sm:$0xff]  }
  0x21   :  { %208 = vmatpush1.bf16.msra.mxu0 %v779_v3  ;;  %v786_v8 = vld [vmem:[#allocation5 + $0x44] ss:$8 sps:$4 sm:$0xff]   ;;  %747 = vmatpush3.bf16.xpose.msra.mxu1 %v795_v9  ;;  %v788_v10 = vld [vmem:[#allocation5 + $0x40] ss:$8 sps:$4 sm:$0xff]   ;;  %v789_v11 = vld [vmem:[#allocation5 + $0x34] ss:$8 sps:$4 sm:$0xff]  }
  0x22   :  { %209 = vmatprep.subr.bf16.mxu0 %v780_v4  ;;  %748 = vmatprep.subr.bf16.mxu1 %v903_v0  ;;  %v802_v12 = vld [vmem:[#allocation2 + $0x30] sm:$0xff]   ;;  %v792_v14 = vld [vmem:[#allocation5 + $0x24] ss:$8 sps:$4 sm:$0xff]   ;;  %v794_v15 = vld [vmem:[#allocation5 + $0x20] ss:$8 sps:$4 sm:$0xff]  }
  0x23   :  { %v791_v13 = vld [vmem:[#allocation5 + $0x30] ss:$8 sps:$4 sm:$0xff]   ;;  %v796_v16 = vld [vmem:[#allocation5 + $0x14] ss:$8 sps:$4 sm:$0xff]   ;;  %v804_v17 = vld [vmem:[#allocation2 + $0x28] sm:$0xff]  }
  0x24   :  { %v798_v18 = vld [vmem:[#allocation5 + $0x10] ss:$8 sps:$4 sm:$0xff]   ;;  %v799_v19 = vld [vmem:[#allocation5 + $0x4] ss:$8 sps:$4 sm:$0xff]   ;;  %v801_v20 = vld [vmem:[#allocation5] ss:$8 sps:$4 sm:$0xff]  }
  0x25   :  { %210 = vmatpush1.bf16.msra.mxu0 %v782_v5  ;;  %v803_v21 = vld [vmem:[#allocation2] sm:$0xff]   ;;  %v805_v23 = vld [vmem:[#allocation2 + $0x8] sm:$0xff]   ;;  %v808_v24 = vld [vmem:[#allocation2 + $0x18] sm:$0xff]  }
  0x26   :  { %211 = vmatprep.subr.bf16.mxu0 %v783_v6  ;;  %v806_v22 = vld [vmem:[#allocation2 + $0x20] sm:$0xff]   ;;  %v807_v25 = vld [vmem:[#allocation2 + $0x10] sm:$0xff]  }
  0x27   :  { %v481_v26 = vld [vmem:[%s973_s2] sm:$0x1]  ;;  %s906_s2 = smov [#allocation8]  }
  0x28   :  { %s541_s29 = sshll.u32 %s906_s2, 4  ;;  %s542_s29 = int_to_ptr.vmem [resolvable:$true] %s541_s29 }
  0x29   :  { %212 = vmatpush1.bf16.msra.mxu0 %v785_v7  ;;  %749 = vmatpush3.bf16.xpose.msra.mxu1 %v802_v12  ;;  %s849_s30 = scalar_lea.vmem %s542_s29, 32  ;;  %p854_p11 = scmp.lt.s32.totalorder %s542_s29, %s542_s29 }
  0x2a   :  { %213 = vmatprep.subr.bf16.mxu0 %v786_v8  ;;  %750 = vmatprep.subr.bf16.mxu1 %v903_v0  ;;  %p850_p10 = scmp.ne.s32.totalorder %s542_s29, %s849_s30  ;;  %p855_p12 = scmp.lt.s32.totalorder %s849_s30, %s849_s30 }
  0x2c   :  { %p856_p13 = por %p855_p12, %p854_p11 }
  0x2d   :  { %214 = vmatpush1.bf16.msra.mxu0 %v788_v10 }
  0x2e   :  { %215 = vmatprep.subr.bf16.mxu0 %v789_v11  ;;  %p857_p0 = pnand %p856_p13, %p850_p10 }
  0x31   :  { %216 = vmatpush1.bf16.msra.mxu0 %v791_v13  ;;  %751 = vmatpush3.bf16.xpose.msra.mxu1 %v804_v17 }
  0x32   :  { %217 = vmatprep.subr.bf16.mxu0 %v792_v14  ;;  %752 = vmatprep.subr.bf16.mxu1 %v903_v0 }
  0x35   :  { %218 = vmatpush1.bf16.msra.mxu0 %v794_v15 }
  0x36   :  { %219 = vmatprep.subr.bf16.mxu0 %v796_v16 }
  0x39   :  { %220 = vmatpush1.bf16.msra.mxu0 %v798_v18  ;;  %753 = vmatpush3.bf16.xpose.msra.mxu1 %v806_v22 }
  0x3a   :  { %221 = vmatprep.subr.bf16.mxu0 %v799_v19  ;;  %754 = vmatprep.subr.bf16.mxu1 %v903_v0 }
  0x3d   :  { %222 = vmatpush1.bf16.msra.mxu0 %v801_v20 }
  0x40   :  { %240 = vmatmul.mubr.bf16.vlgmr.msra.gmra.mxu0 %v803_v21 }
  0x41   :  { %249 = vmatprep.mubr.bf16.mxu0 %v904_v1  ;;  %755 = vmatpush3.bf16.xpose.msra.mxu1 %v808_v24 }
  0x42   :  { %756 = vmatprep.subr.bf16.mxu1 %v903_v0 }
  0x48   :  { %250 = vmatmul.mubr.bf16.gmra.mxu0 %v805_v23 }
  0x49   :  { %259 = vmatprep.mubr.bf16.mxu0 %v904_v1  ;;  %757 = vmatpush3.bf16.xpose.msra.mxu1 %v807_v25 }
  0x4a   :  { %758 = vmatprep.subr.bf16.mxu1 %v903_v0 }
  0x50   :  { %260 = vmatmul.mubr.bf16.gmra.mxu0 %v807_v25 }
  0x51   :  { %269 = vmatprep.mubr.bf16.mxu0 %v904_v1  ;;  %759 = vmatpush3.bf16.xpose.msra.mxu1 %v805_v23 }
  0x52   :  { %760 = vmatprep.subr.bf16.mxu1 %v903_v0 }
  0x58   :  { %270 = vmatmul.mubr.bf16.gmra.mxu0 %v808_v24 }
  0x59   :  { %279 = vmatprep.mubr.bf16.mxu0 %v904_v1  ;;  %761 = vmatpush3.bf16.xpose.msra.mxu1 %v803_v21 }
  0x60   :  { %280 = vmatmul.mubr.bf16.gmra.mxu0 %v806_v22  ;;  %763 = vmatmul.mubr.bf16.vlgmr.msra.gmra.mxu1 %v481_v26 }
  0x61   :  { %289 = vmatprep.mubr.bf16.mxu0 %v904_v1 }
  0x68   :  { %290 = vmatmul.mubr.bf16.gmra.mxu0 %v804_v17 }
  0x69   :  { %299 = vmatprep.mubr.bf16.mxu0 %v904_v1 }
  0x70   :  { %300 = vmatmul.mubr.bf16.gmra.mxu0 %v802_v12 }
  0x71   :  { %309 = vmatprep.mubr.bf16.mxu0 %v904_v1 }
  0x78   :  { %310 = vmatmul.mubr.bf16.gmra.mxu0 %v795_v9 }
 0x100   :  { %v241_v27 = vpop.f32.mrf.mxu0 }
 0x102   :  { %v243_v28 = vpop.f32.mrf.mxu0 }
 0x104   :  { %v245_v29 = vpop.f32.mrf.mxu0 }
 0x105   :  { %v646_v30 = vpack.c.bf16 %v245_v29, %v241_v27 }
 0x106   :  { %v247_v31 = vpop.f32.mrf.mxu0 }
 0x107   :  { %647 = vst [vmem:[#allocation7] sm:$0xff] %v646_v30   ;;  %v686_v32 = vpack.c.bf16 %v247_v31, %v243_v28 }
 0x108   :  { %v251_v33 = vpop.f32.mrf.mxu0 }
 0x109   :  { %687 = vst [vmem:[#allocation7 + $0x40] sm:$0xff] %v686_v32  }
 0x10a   :  { %v253_v34 = vpop.f32.mrf.mxu0 }
 0x10c   :  { %v255_v35 = vpop.f32.mrf.mxu0 }
 0x10d   :  { %v651_v36 = vpack.c.bf16 %v255_v35, %v251_v33 }
 0x10e   :  { %v257_v37 = vpop.f32.mrf.mxu0 }
 0x10f   :  { %723 = vst [vmem:[#allocation7 + $0x8] sm:$0xff] %v651_v36   ;;  %v691_v38 = vpack.c.bf16 %v257_v37, %v253_v34 }
 0x110   :  { %v261_v39 = vpop.f32.mrf.mxu0 }
 0x111   :  { %730 = vst [vmem:[#allocation7 + $0x48] sm:$0xff] %v691_v38  }
 0x112   :  { %v263_v40 = vpop.f32.mrf.mxu0 }
 0x114   :  { %v265_v41 = vpop.f32.mrf.mxu0 }
 0x115   :  { %v656_v42 = vpack.c.bf16 %v265_v41, %v261_v39 }
 0x116   :  { %v267_v43 = vpop.f32.mrf.mxu0 }
 0x117   :  { %724 = vst [vmem:[#allocation7 + $0x10] sm:$0xff] %v656_v42   ;;  %v696_v44 = vpack.c.bf16 %v267_v43, %v263_v40 }
 0x118   :  { %v271_v45 = vpop.f32.mrf.mxu0 }
 0x119   :  { %731 = vst [vmem:[#allocation7 + $0x50] sm:$0xff] %v696_v44  }
 0x11a   :  { %v273_v46 = vpop.f32.mrf.mxu0 }
 0x11c   :  { %v275_v47 = vpop.f32.mrf.mxu0 }
 0x11d   :  { %v661_v48 = vpack.c.bf16 %v275_v47, %v271_v45 }
 0x11e   :  { %v277_v49 = vpop.f32.mrf.mxu0 }
 0x11f   :  { %725 = vst [vmem:[#allocation7 + $0x18] sm:$0xff] %v661_v48   ;;  %v701_v50 = vpack.c.bf16 %v277_v49, %v273_v46 }
 0x120   :  { %v281_v51 = vpop.f32.mrf.mxu0  ;;  %v516_v57 = vpop.f32.mrf.mxu1 }
 0x121   :  { %732 = vst [vmem:[#allocation7 + $0x58] sm:$0xff] %v701_v50   ;;  %522 = vst [vmem:[#allocation8] sm:$0x3] %v516_v57 }
 0x122   :  { %v283_v52 = vpop.f32.mrf.mxu0  ;;  %v764_v59 = vpop.f32.mrf.mxu1 }
 0x124   :  { %v285_v53 = vpop.f32.mrf.mxu0 }
 0x125   :  { %v666_v54 = vpack.c.bf16 %v285_v53, %v281_v51 }
 0x126   :  { %v287_v55 = vpop.f32.mrf.mxu0 }
 0x127   :  { %726 = vst [vmem:[#allocation7 + $0x20] sm:$0xff] %v666_v54   ;;  %v706_v56 = vpack.c.bf16 %v287_v55, %v283_v52 }
 0x128   :  { %v291_v58 = vpop.f32.mrf.mxu0 }
 0x129   :  { %733 = vst [vmem:[#allocation7 + $0x60] sm:$0xff] %v706_v56  }
 0x12a   :  { %860 = shalt.err (!%p857_p0)
}
 0x12b   :  { %544 = dma.vmem_to_hbm [thread:$0]  %s542_s29, 32, %s975_s4, [#allocation9]   ;;  %v293_v60 = vpop.f32.mrf.mxu0  ;;  %v519_v61 = vpop.f32.mrf.mxu1 }
 0x12c   :  { %s907_s4 = smov [#allocation7]  }
 0x12d   :  { %v295_v62 = vpop.f32.mrf.mxu0  ;;  %v765_v0 = vpop.f32.mrf.mxu1  ;;  %s528_s7 = sshll.u32 %s907_s4, 4  ;;  %s529_s7 = int_to_ptr.vmem [resolvable:$true] %s528_s7 }
 0x12e   :  { %v671_v63 = vpack.c.bf16 %v295_v62, %v291_v58  ;;  %s869_s8 = scalar_lea.vmem %s529_s7, 2048  ;;  %p874_p2 = scmp.lt.s32.totalorder %s529_s7, %s529_s7 }
 0x12f   :  { %v297_v1 = vpop.f32.mrf.mxu0  ;;  %p870_p1 = scmp.ne.s32.totalorder %s529_s7, %s869_s8  ;;  %p875_p3 = scmp.lt.s32.totalorder %s869_s8, %s869_s8 }
 0x130   :  { %727 = vst [vmem:[#allocation7 + $0x28] sm:$0xff] %v671_v63   ;;  %v711_v2 = vpack.c.bf16 %v297_v1, %v293_v60 }
 0x131   :  { %v301_v3 = vpop.f32.mrf.mxu0  ;;  %p876_p4 = por %p875_p3, %p874_p2 }
 0x132   :  { %734 = vst [vmem:[#allocation7 + $0x68] sm:$0xff] %v711_v2  }
 0x133   :  { %v303_v4 = vpop.f32.mrf.mxu0  ;;  %p877_p5 = pnand %p876_p4, %p870_p1 }
 0x135   :  { %v305_v5 = vpop.f32.mrf.mxu0 }
 0x136   :  { %v676_v6 = vpack.c.bf16 %v305_v5, %v301_v3 }
 0x137   :  { %v307_v7 = vpop.f32.mrf.mxu0 }
 0x138   :  { %728 = vst [vmem:[#allocation7 + $0x30] sm:$0xff] %v676_v6   ;;  %v716_v8 = vpack.c.bf16 %v307_v7, %v303_v4 }
 0x139   :  { %v311_v9 = vpop.f32.mrf.mxu0 }
 0x13a   :  { %735 = vst [vmem:[#allocation7 + $0x70] sm:$0xff] %v716_v8  }
 0x13b   :  { %v313_v10 = vpop.f32.mrf.mxu0 }
 0x13d   :  { %v315_v11 = vpop.f32.mrf.mxu0 }
 0x13e   :  { %v681_v12 = vpack.c.bf16 %v315_v11, %v311_v9 }
 0x13f   :  { %v317_v13 = vpop.f32.mrf.mxu0 }
 0x140   :  { %729 = vst [vmem:[#allocation7 + $0x38] sm:$0xff] %v681_v12   ;;  %v721_v14 = vpack.c.bf16 %v317_v13, %v313_v10 }
 0x142   :  { %736 = vst [vmem:[#allocation7 + $0x78] sm:$0xff] %v721_v14  }
 0x143   :  { %880 = shalt.err (!%p877_p5)
}
 0x144   :  { %534 = dma.vmem_to_hbm [thread:$0]  %s529_s7, 2048, %s974_s3, [#allocation4], %s898_s18, %s898_s18, %s899_s19  }
 0x145   :  { %893 = dma.done.wait [#allocation4], 2048  }
 0x146   :  { %894 = vsyncadd [#allocation4], 4294965248 }
 0x147   :  { %895 = dma.done.wait [#allocation9], 32  }
 0x148   :  { %896 = vsyncadd [#allocation9], 4294967264 }
 0x149   :  { %551 = vsyncpa [#allocation3], 1 }
 0x14a   :  { %552 = vsyncpa [#allocation6], 1 }
 0x14b   :  { %553 = vsyncpa [#allocation4], 1 }
 0x14c   :  { %554 = vsyncpa [#allocation9], 1 }

</bundles_post_ra>
